<compile_context>
chip_gen: v7x
topology: tpu7x:2x2x1
jax: 0.10.0
libtpu: 0.0.40
codegen_flags: <defaults>
</compile_context>

<pallas_src>
import functools

import jax
import jax.numpy as jnp
from jax.experimental import pallas as pl
from jax.experimental.pallas import tpu as pltpu


def _round_up(v, m):
    return ((v + m - 1) // m) * m


def _cdiv(a, b):
    return -(-a // b)


def _encoder_kernel(x_dim, n_layers, compute_dtype, *refs):
    """Fused MLP forward for one batch tile.

    refs = (x_ref, w0, b0, [w_i, b_i] * n_layers, wo, bo, y_ref)
    Weights are (in, out); activations are (bb, features) with the hidden
    width padded to a 128-lane multiple (lane-dense intermediates).
    """
    x_ref = refs[0]
    y_ref = refs[-1]
    p = refs[1:-1]

    x = x_ref[...]
    w0 = p[0][...]
    b0 = p[1][...]

    if x_dim <= 8:
        # Degenerate-K first layer (K = x_dim, e.g. 2): a couple of f32 VPU
        # broadcast FMAs beat pushing a depth-2 contraction through the MXU.
        h = x[:, 0:1] * w0[0:1, :]
        for k in range(1, x_dim):
            h = h + x[:, k:k + 1] * w0[k:k + 1, :]
        h = h + b0
    else:
        h = jnp.dot(x.astype(compute_dtype), w0,
                    preferred_element_type=jnp.float32) + b0
    h = jnp.maximum(h, 0.0)

    # Hidden layers: MXU matmul (bf16 or f32 operands), f32 accumulation,
    # bias add + ReLU on the VPU in f32.
    for i in range(n_layers):
        w = p[2 + 2 * i][...]
        b = p[3 + 2 * i][...]
        h = jnp.dot(h.astype(compute_dtype), w,
                    preferred_element_type=jnp.float32) + b
        h = jnp.maximum(h, 0.0)

    # Output layer: result is (bb, 2*zdim), unpadded -- only real bytes are
    # stored / DMA'd back to HBM.
    wo = p[-2][...]
    bo = p[-1][...]
    y = jnp.dot(h.astype(compute_dtype), wo,
                preferred_element_type=jnp.float32) + bo
    y_ref[...] = y.astype(y_ref.dtype)


def _prepare_params(params, x_dim, num_hidden, use_bf16):
    """Zero-pad hidden width to a 128-lane multiple; cast MXU weights."""
    n_layers = (len(params) - 4) // 2
    hid_pad = _round_up(num_hidden, 128)
    pad = hid_pad - num_hidden
    wdt = jnp.bfloat16 if use_bf16 else jnp.float32

    w0 = jnp.pad(params[0], ((0, 0), (0, pad)))
    b0 = jnp.pad(params[1], ((0, 0), (0, pad)))
    if x_dim > 8:                      # first layer goes through the MXU
        w0 = w0.astype(wdt)
    kparams = [w0, b0]
    for i in range(n_layers):
        w = jnp.pad(params[2 + 2 * i], ((0, pad), (0, pad))).astype(wdt)
        b = jnp.pad(params[3 + 2 * i], ((0, 0), (0, pad)))
        kparams += [w, b]
    kparams += [jnp.pad(params[-2], ((0, pad), (0, 0))).astype(wdt),
                params[-1]]
    return kparams, hid_pad, n_layers


def _pick_batch_tile(B, block_b):
    """Balanced, sublane-aligned batch tile with >=2 grid steps when possible
    (so the 'parallel' axis shards across both v7x TensorCores and the
    BlockSpec pipeline has something to double-buffer)."""
    b8 = _round_up(max(B, 1), 8)
    steps = max(_cdiv(b8, block_b), 1)
    if b8 >= 16:
        steps = max(steps, 2)
    bb = _round_up(_cdiv(b8, steps), 8)
    steps = _cdiv(b8, bb)              # recompute after sublane rounding
    return bb, bb * steps, steps


def encoder_simple_forward(x, params, zdim, *, block_b=2048, use_bf16=True):
    """x: [B, x_dim] float32.  params: [w0, b0, (w_i, b_i)*n_layers, wo, bo],
    weights (in, out), biases (1, out).  Returns (mu, logvar)."""
    B, x_dim = x.shape
    num_hidden = params[0].shape[1]
    out_real = params[-2].shape[1]                 # 2 * zdim

    kparams, hid_pad, n_layers = _prepare_params(
        params, x_dim, num_hidden, use_bf16)

    bb, b_pad, steps = _pick_batch_tile(B, block_b)
    x_p = jnp.pad(x, ((0, b_pad - B), (0, 0))) if b_pad != B else x

    in_specs = [pl.BlockSpec((bb, x_dim), lambda i: (i, 0))]
    for prm in kparams:
        # Weights/biases: one full block with a constant block index -> DMA'd
        # once, resident in VMEM across the whole batch grid.
        in_specs.append(pl.BlockSpec(prm.shape, lambda i: (0, 0)))
    # Unpadded output: block last dim == full array last dim (2*zdim), so the
    # HBM writeback carries only real bytes (no 128-lane garbage padding).
    out_specs = pl.BlockSpec((bb, out_real), lambda i: (i, 0))

    flops = 2 * b_pad * (x_dim * hid_pad
                         + n_layers * hid_pad * hid_pad
                         + hid_pad * out_real)
    bytes_accessed = (int(x_p.size) * x_p.dtype.itemsize
                      + sum(int(p.size) * p.dtype.itemsize for p in kparams)
                      + b_pad * out_real * 4)

    compute_dtype = jnp.bfloat16 if use_bf16 else jnp.float32
    kernel = functools.partial(_encoder_kernel, x_dim, n_layers, compute_dtype)

    y = pl.pallas_call(
        kernel,
        out_shape=jax.ShapeDtypeStruct((b_pad, out_real), jnp.float32),
        grid=(steps,),
        in_specs=in_specs,
        out_specs=out_specs,
        compiler_params=pltpu.CompilerParams(
            dimension_semantics=("parallel",)),
        cost_estimate=pl.CostEstimate(
            flops=flops, transcendentals=0, bytes_accessed=bytes_accessed),
    )(x_p, *kparams)

    # Unpad + chunk(2, dim=1) in the wrapper (free XLA slices).
    y = y[:B]
    mu, logvar = y[:, :zdim], y[:, zdim:2 * zdim]
    return mu, logvar


def init_params(key, x_dim, zdim, n_layers, num_hidden):
    """Deterministic synthetic parameters (shapes match the torch module)."""
    dims = [(x_dim, num_hidden)]
    for _ in range(n_layers):
        dims.append((num_hidden, num_hidden))
    dims.append((num_hidden, 2 * zdim))

    params = []
    for (d_in, d_out) in dims:
        key, kw, kb = jax.random.split(key, 3)
        bound = 1.0 / jnp.sqrt(jnp.float32(d_in))
        w = jax.random.uniform(kw, (d_in, d_out), jnp.float32, -bound, bound)
        b = jax.random.uniform(kb, (1, d_out), jnp.float32, -bound, bound)
        params.extend([w, b])
    return params


if __name__ == "__main__":
    x_dim, zdim, n_layers, num_hidden = 2, 2, 2, 64
    batch = 8

    key = jax.random.PRNGKey(0)
    key, kx = jax.random.split(key)
    x = jax.random.normal(kx, (batch, x_dim), jnp.float32)
    params = init_params(key, x_dim, zdim, n_layers, num_hidden)

    # Pure-JAX reference of the same math.
    def ref_forward(xin, prms):
        h = xin
        for i in range(0, len(prms) - 2, 2):
            h = jnp.maximum(h @ prms[i] + prms[i + 1], 0.0)
        y = h @ prms[-2] + prms[-1]
        return y[:, :zdim], y[:, zdim:]

    mu_ref, logvar_ref = ref_forward(x, params)

    # 1) f32 MXU path (tight check).
    mu32, lv32 = encoder_simple_forward(x, params, zdim, use_bf16=False)
    jax.block_until_ready((mu32, lv32))
    assert mu32.shape == (batch, zdim) and lv32.shape == (batch, zdim)
    assert jnp.allclose(mu32, mu_ref, atol=1e-4, rtol=1e-4), "mu mismatch (f32)"
    assert jnp.allclose(lv32, logvar_ref, atol=1e-4, rtol=1e-4), "logvar mismatch (f32)"

    # 2) default bf16 MXU path (relaxed check).
    mu16, lv16 = encoder_simple_forward(x, params, zdim)
    jax.block_until_ready((mu16, lv16))
    assert jnp.allclose(mu16, mu_ref, atol=5e-2, rtol=1e-1), "mu mismatch (bf16)"
    assert jnp.allclose(lv16, logvar_ref, atol=5e-2, rtol=1e-1), "logvar mismatch (bf16)"

    # 3) Awkward batch size: exercises the multi-step grid + balanced padding.
    xb = jax.random.normal(jax.random.PRNGKey(1), (300, x_dim), jnp.float32)
    mub, lvb = encoder_simple_forward(xb, params, zdim, use_bf16=False)
    jax.block_until_ready((mub, lvb))
    mub_ref, lvb_ref = ref_forward(xb, params)
    assert mub.shape == (300, zdim) and lvb.shape == (300, zdim)
    assert jnp.allclose(mub, mub_ref, atol=1e-4, rtol=1e-4), "mu mismatch (B=300)"
    assert jnp.allclose(lvb, lvb_ref, atol=1e-4, rtol=1e-4), "logvar mismatch (B=300)"

    print("KERNEL_OK")
</pallas_src>

<mosaic_0001>
module attributes {stable_mosaic.version = 11 : i64} {
  func.func @_encoder_kernel(%arg0: i32, %arg1: memref<8x2xf32, #tpu.memory_space<vmem>>, %arg2: memref<2x128xf32, #tpu.memory_space<vmem>>, %arg3: memref<1x128xf32, #tpu.memory_space<vmem>>, %arg4: memref<128x128xf32, #tpu.memory_space<vmem>>, %arg5: memref<1x128xf32, #tpu.memory_space<vmem>>, %arg6: memref<128x128xf32, #tpu.memory_space<vmem>>, %arg7: memref<1x128xf32, #tpu.memory_space<vmem>>, %arg8: memref<128x4xf32, #tpu.memory_space<vmem>>, %arg9: memref<1x4xf32, #tpu.memory_space<vmem>>, %arg10: memref<8x4xf32, #tpu.memory_space<vmem>>) attributes {dimension_semantics = [#tpu.dimension_semantics<parallel>], iteration_bounds = array<i64: 1>, scalar_prefetch = 0 : i64, scratch_operands = 0 : i64, tpu.core_type = #tpu.core_type<tc>, window_params = [{transform_indices = @transform_0, window_bounds = array<i64: 8, 2>}, {pipeline_mode = #tpu.pipeline_mode<synchronous>, transform_indices = @transform_1, window_bounds = array<i64: 2, 128>}, {pipeline_mode = #tpu.pipeline_mode<synchronous>, transform_indices = @transform_2, window_bounds = array<i64: 1, 128>}, {pipeline_mode = #tpu.pipeline_mode<synchronous>, transform_indices = @transform_3, window_bounds = array<i64: 128, 128>}, {pipeline_mode = #tpu.pipeline_mode<synchronous>, transform_indices = @transform_4, window_bounds = array<i64: 1, 128>}, {pipeline_mode = #tpu.pipeline_mode<synchronous>, transform_indices = @transform_5, window_bounds = array<i64: 128, 128>}, {pipeline_mode = #tpu.pipeline_mode<synchronous>, transform_indices = @transform_6, window_bounds = array<i64: 1, 128>}, {pipeline_mode = #tpu.pipeline_mode<synchronous>, transform_indices = @transform_7, window_bounds = array<i64: 128, 4>}, {pipeline_mode = #tpu.pipeline_mode<synchronous>, transform_indices = @transform_8, window_bounds = array<i64: 1, 4>}, {transform_indices = @transform_9, window_bounds = array<i64: 8, 4>}]} {
    %c0 = arith.constant 0 : index
    %c0_0 = arith.constant 0 : index
    %0 = vector.load %arg1[%c0, %c0_0] : memref<8x2xf32, #tpu.memory_space<vmem>>, vector<8x2xf32>
    %c0_1 = arith.constant 0 : index
    %c0_2 = arith.constant 0 : index
    %1 = vector.load %arg2[%c0_1, %c0_2] : memref<2x128xf32, #tpu.memory_space<vmem>>, vector<2x128xf32>
    %c0_3 = arith.constant 0 : index
    %c0_4 = arith.constant 0 : index
    %2 = vector.load %arg3[%c0_3, %c0_4] : memref<1x128xf32, #tpu.memory_space<vmem>>, vector<1x128xf32>
    %3 = vector.extract_strided_slice %0 {offsets = [0, 0], sizes = [8, 1], strides = [1, 1]} : vector<8x2xf32> to vector<8x1xf32>
    %4 = vector.extract_strided_slice %1 {offsets = [0, 0], sizes = [1, 128], strides = [1, 1]} : vector<2x128xf32> to vector<1x128xf32>
    %5 = vector.broadcast %3 : vector<8x1xf32> to vector<8x128xf32>
    %6 = vector.broadcast %4 : vector<1x128xf32> to vector<8x128xf32>
    %7 = arith.mulf %5, %6 : vector<8x128xf32>
    %8 = vector.extract_strided_slice %0 {offsets = [0, 1], sizes = [8, 1], strides = [1, 1]} : vector<8x2xf32> to vector<8x1xf32>
    %9 = vector.extract_strided_slice %1 {offsets = [1, 0], sizes = [1, 128], strides = [1, 1]} : vector<2x128xf32> to vector<1x128xf32>
    %10 = vector.broadcast %8 : vector<8x1xf32> to vector<8x128xf32>
    %11 = vector.broadcast %9 : vector<1x128xf32> to vector<8x128xf32>
    %12 = arith.mulf %10, %11 : vector<8x128xf32>
    %13 = arith.addf %7, %12 : vector<8x128xf32>
    %14 = vector.broadcast %2 : vector<1x128xf32> to vector<8x128xf32>
    %15 = arith.addf %13, %14 : vector<8x128xf32>
    %cst = arith.constant 0.000000e+00 : f32
    %16 = vector.broadcast %cst : f32 to vector<8x128xf32>
    %17 = arith.maximumf %15, %16 : vector<8x128xf32>
    %c0_5 = arith.constant 0 : index
    %c0_6 = arith.constant 0 : index
    %18 = vector.load %arg4[%c0_5, %c0_6] : memref<128x128xf32, #tpu.memory_space<vmem>>, vector<128x128xf32>
    %c0_7 = arith.constant 0 : index
    %c0_8 = arith.constant 0 : index
    %19 = vector.load %arg5[%c0_7, %c0_8] : memref<1x128xf32, #tpu.memory_space<vmem>>, vector<1x128xf32>
    %cst_9 = arith.constant dense<0.000000e+00> : vector<8x128xf32>
    %20 = tpu.matmul %17, %18, %cst_9 {dimension_numbers = #tpu.dot_dimension_numbers<[1], [0], [0], [1], [0, 0, 1, 1], [], []>} : vector<8x128xf32>, vector<128x128xf32>, vector<8x128xf32> -> vector<8x128xf32>
    %21 = vector.broadcast %19 : vector<1x128xf32> to vector<8x128xf32>
    %22 = arith.addf %20, %21 : vector<8x128xf32>
    %cst_10 = arith.constant 0.000000e+00 : f32
    %23 = vector.broadcast %cst_10 : f32 to vector<8x128xf32>
    %24 = arith.maximumf %22, %23 : vector<8x128xf32>
    %c0_11 = arith.constant 0 : index
    %c0_12 = arith.constant 0 : index
    %25 = vector.load %arg6[%c0_11, %c0_12] : memref<128x128xf32, #tpu.memory_space<vmem>>, vector<128x128xf32>
    %c0_13 = arith.constant 0 : index
    %c0_14 = arith.constant 0 : index
    %26 = vector.load %arg7[%c0_13, %c0_14] : memref<1x128xf32, #tpu.memory_space<vmem>>, vector<1x128xf32>
    %cst_15 = arith.constant dense<0.000000e+00> : vector<8x128xf32>
    %27 = tpu.matmul %24, %25, %cst_15 {dimension_numbers = #tpu.dot_dimension_numbers<[1], [0], [0], [1], [0, 0, 1, 1], [], []>} : vector<8x128xf32>, vector<128x128xf32>, vector<8x128xf32> -> vector<8x128xf32>
    %28 = vector.broadcast %26 : vector<1x128xf32> to vector<8x128xf32>
    %29 = arith.addf %27, %28 : vector<8x128xf32>
    %cst_16 = arith.constant 0.000000e+00 : f32
    %30 = vector.broadcast %cst_16 : f32 to vector<8x128xf32>
    %31 = arith.maximumf %29, %30 : vector<8x128xf32>
    %c0_17 = arith.constant 0 : index
    %c0_18 = arith.constant 0 : index
    %32 = vector.load %arg8[%c0_17, %c0_18] : memref<128x4xf32, #tpu.memory_space<vmem>>, vector<128x4xf32>
    %c0_19 = arith.constant 0 : index
    %c0_20 = arith.constant 0 : index
    %33 = vector.load %arg9[%c0_19, %c0_20] : memref<1x4xf32, #tpu.memory_space<vmem>>, vector<1x4xf32>
    %cst_21 = arith.constant dense<0.000000e+00> : vector<8x4xf32>
    %34 = tpu.matmul %31, %32, %cst_21 {dimension_numbers = #tpu.dot_dimension_numbers<[1], [0], [0], [1], [0, 0, 1, 1], [], []>} : vector<8x128xf32>, vector<128x4xf32>, vector<8x4xf32> -> vector<8x4xf32>
    %35 = vector.broadcast %33 : vector<1x4xf32> to vector<8x4xf32>
    %36 = arith.addf %34, %35 : vector<8x4xf32>
    %c0_22 = arith.constant 0 : index
    %c0_23 = arith.constant 0 : index
    %37 = vector.load %arg10[%c0_22, %c0_23] : memref<8x4xf32, #tpu.memory_space<vmem>>, vector<8x4xf32>
    tpu.vector_store %arg10[%c0_22, %c0_23], %36 {strides = array<i32>} : memref<8x4xf32, #tpu.memory_space<vmem>>, vector<8x4xf32>,
    return
  }
  func.func @transform_0(%arg0: i32) -> (i32, i32) {
    %c0_i32 = arith.constant 0 : i32
    %c0_i32_0 = arith.constant 0 : i32
    return %arg0, %c0_i32 : i32, i32
  }
  func.func @transform_1(%arg0: i32) -> (i32, i32) {
    %c0_i32 = arith.constant 0 : i32
    %c0_i32_0 = arith.constant 0 : i32
    %c0_i32_1 = arith.constant 0 : i32
    return %c0_i32, %c0_i32_0 : i32, i32
  }
  func.func @transform_2(%arg0: i32) -> (i32, i32) {
    %c0_i32 = arith.constant 0 : i32
    %c0_i32_0 = arith.constant 0 : i32
    %c0_i32_1 = arith.constant 0 : i32
    return %c0_i32, %c0_i32_0 : i32, i32
  }
  func.func @transform_3(%arg0: i32) -> (i32, i32) {
    %c0_i32 = arith.constant 0 : i32
    %c0_i32_0 = arith.constant 0 : i32
    %c0_i32_1 = arith.constant 0 : i32
    return %c0_i32, %c0_i32_0 : i32, i32
  }
  func.func @transform_4(%arg0: i32) -> (i32, i32) {
    %c0_i32 = arith.constant 0 : i32
    %c0_i32_0 = arith.constant 0 : i32
    %c0_i32_1 = arith.constant 0 : i32
    return %c0_i32, %c0_i32_0 : i32, i32
  }
  func.func @transform_5(%arg0: i32) -> (i32, i32) {
    %c0_i32 = arith.constant 0 : i32
    %c0_i32_0 = arith.constant 0 : i32
    %c0_i32_1 = arith.constant 0 : i32
    return %c0_i32, %c0_i32_0 : i32, i32
  }
  func.func @transform_6(%arg0: i32) -> (i32, i32) {
    %c0_i32 = arith.constant 0 : i32
    %c0_i32_0 = arith.constant 0 : i32
    %c0_i32_1 = arith.constant 0 : i32
    return %c0_i32, %c0_i32_0 : i32, i32
  }
  func.func @transform_7(%arg0: i32) -> (i32, i32) {
    %c0_i32 = arith.constant 0 : i32
    %c0_i32_0 = arith.constant 0 : i32
    %c0_i32_1 = arith.constant 0 : i32
    return %c0_i32, %c0_i32_0 : i32, i32
  }
  func.func @transform_8(%arg0: i32) -> (i32, i32) {
    %c0_i32 = arith.constant 0 : i32
    %c0_i32_0 = arith.constant 0 : i32
    %c0_i32_1 = arith.constant 0 : i32
    return %c0_i32, %c0_i32_0 : i32, i32
  }
  func.func @transform_9(%arg0: i32) -> (i32, i32) {
    %c0_i32 = arith.constant 0 : i32
    %c0_i32_0 = arith.constant 0 : i32
    return %arg0, %c0_i32 : i32, i32
  }
}

</mosaic_0001>

<bundles_post_ra>
// kernel: tpu_custom_call.1
= control target key start
LH: loop header
LB: loop body
LE: loop exit
PB: predicated region body
PF: predicated region fallthrough
CT: control target
= control target key end

     0   :  { %14 = vsyncpa [#allocation3], 0  ;;  %s631_s30 = smov [#allocation2]   ;;  %s848_s0 = inlined_call_operand.vmem [shape: f32[8,2], index: 0, kind: input, shape index: {}]   ;;  %s849_s1 = inlined_call_operand.vmem [shape: f32[2,128], index: 1, kind: input, shape index: {}]   ;;  %s850_s2 = inlined_call_operand.vmem [shape: f32[1,128], index: 2, kind: input, shape index: {}]   ;;  %s851_s3 = inlined_call_operand.vmem [shape: f32[128,128], index: 3, kind: input, shape index: {}]   ;;  %s852_s4 = inlined_call_operand.vmem [shape: f32[1,128], index: 4, kind: input, shape index: {}]   ;;  %s853_s5 = inlined_call_operand.hbm [shape: f32[128,128], index: 5, kind: input, shape index: {}]   ;;  %s854_s6 = inlined_call_operand.vmem [shape: f32[1,128], index: 6, kind: input, shape index: {}]   ;;  %s855_s7 = inlined_call_operand.vmem [shape: f32[128,4], index: 7, kind: input, shape index: {}]   ;;  %s856_s8 = inlined_call_operand.vmem [shape: f32[1,4], index: 8, kind: input, shape index: {}]   ;;  %s857_s9 = inlined_call_operand.vmem [shape: f32[8,4], index: 9, kind: output, shape index: {}]  }
   0x1   :  { %s30_s10 = sshll.u32 %s631_s30, 4  ;;  %s607_s13 = scalar_lea.hbm %s853_s5, 2048  ;;  %s31_s10 = int_to_ptr.vmem [resolvable:$true] %s30_s10 }
   0x2   :  { %p608_p0 = scmp.ne.s32.totalorder %s853_s5, %s607_s13  ;;  %p611_p1 = scmp.lt.u32.totalorder %s607_s13, %s853_s5 }
   0x4   :  { %p613_p2 = pnand %p611_p1, %p608_p0 }
   0x6   :  { %616 = shalt.err (!%p613_p2)
}
   0x7   :  { %s617_s18 = scalar_lea.vmem %s31_s10, 2048  ;;  %p622_p4 = scmp.lt.s32.totalorder %s31_s10, %s31_s10 }
   0x8   :  { %p618_p3 = scmp.ne.s32.totalorder %s31_s10, %s617_s18  ;;  %p623_p5 = scmp.lt.s32.totalorder %s617_s18, %s617_s18 }
   0xa   :  { %p624_p6 = por %p623_p5, %p622_p4 }
   0xc   :  { %p625_p7 = pnand %p624_p6, %p618_p3 }
   0xe   :  { %628 = shalt.err (!%p625_p7)
}
   0xf   :  { %s632_s19 = smov 128   ;;  %s633_s20 = smov 8  }
  0x10   :  { %36 = dma.hbm_to_vmem [thread:$0]  %s853_s5, 2048, %s31_s10, [#allocation3], %s632_s19, %s632_s19, %s633_s20  }
  0x11   :  { %629 = dma.done.wait [#allocation3], 2048  }
  0x12   :  { %630 = vsyncadd [#allocation3], 4294965248  ;;  %v634_v0 = vmov 0   ;;  %v635_v1 = vmov 0.0|0.0   ;;  %v46_v2 = vld [vmem:[%s848_s0] sm:$0xff]  ;;  %v78_v4 = vld [vmem:[%s851_s3 + $0x8] sm:$0xff]  ;;  %v54_v50 = vlaneseq }
  0x13   :  { %605 = vset.pattern.permute.xlu0 %v634_v0  ;;  %525 = vmatprep.subr.bf16.mxu0 %v635_v1  ;;  %v77_v3 = vld [vmem:[%s851_s3] sm:$0xff]  ;;  %v79_v6 = vld [vmem:[%s851_s3 + $0x10] sm:$0xff]  ;;  %v80_v7 = vld [vmem:[%s851_s3 + $0x18] sm:$0xff]  ;;  %v636_v11 = vmov 1   ;;  %vm637_vm0 = vmmov 0   ;;  %v638_v15 = vmov 0.0  }
  0x14   :  { %549 = vmatprep.subr.bf16.mxu1 %v635_v1  ;;  %51 = vperm.xlu0 %605, %v46_v2   ;;  %v526_v5 = vpack.c.bf16 %v78_v4, %v77_v3  ;;  %v529_v8 = vpack.c.bf16 %v80_v7, %v79_v6  ;;  %v81_v9 = vld [vmem:[%s851_s3 + $0x20] sm:$0xff]  ;;  %v82_v10 = vld [vmem:[%s851_s3 + $0x28] sm:$0xff]  ;;  %v83_v13 = vld [vmem:[%s851_s3 + $0x30] sm:$0xff]  ;;  %v55_v51 = vshrl.u32 %v54_v50, 7  ;;  %vm358_vm1 = vcmask 31744  }
  0x15   :  { %v532_v12 = vpack.c.bf16 %v82_v10, %v81_v9  ;;  %v84_v14 = vld [vmem:[%s851_s3 + $0x38] sm:$0xff]  ;;  %452 = vmatprep.mubr.msk.f32.mxu0 %vm637_vm0, %v638_v15  ;;  %487 = vmatprep.mubr.msk.f32.mxu1 %vm637_vm0, %v638_v15  ;;  %v85_v17 = vld [vmem:[%s851_s3 + $0x40] sm:$0xff]  ;;  %v86_v18 = vld [vmem:[%s851_s3 + $0x48] sm:$0xff] }
  0x16   :  { %527 = vmatpush3.bf16.msra.mxu0 %v526_v5  ;;  %v535_v16 = vpack.c.bf16 %v84_v14, %v83_v13  ;;  %v171_v19 = vld [vmem:[#allocation2] sm:$0xff]  ;;  %v172_v20 = vld [vmem:[#allocation2 + $0x8] sm:$0xff]  ;;  %v173_v21 = vld [vmem:[#allocation2 + $0x10] sm:$0xff]  ;;  %v538_v22 = vpack.c.bf16 %v86_v18, %v85_v17  ;;  %v56_v52 = vsub.s32 0, %v55_v51  ;;  %v65_v53 = vsub.s32 1, %v55_v51 }
  0x17   :  { %528 = vmatprep.subr.bf16.mxu0 %v635_v1  ;;  %v550_v23 = vpack.c.bf16 %v172_v20, %v171_v19  ;;  %v174_v24 = vld [vmem:[#allocation2 + $0x18] sm:$0xff]  ;;  %v87_v25 = vld [vmem:[%s851_s3 + $0x50] sm:$0xff]  ;;  %v88_v26 = vld [vmem:[%s851_s3 + $0x58] sm:$0xff] }
  0x18   :  { %606 = vset.pattern.permute.xlu0 %v636_v11  ;;  %v553_v27 = vpack.c.bf16 %v174_v24, %v173_v21  ;;  %v175_v28 = vld [vmem:[#allocation2 + $0x20] sm:$0xff]  ;;  %v176_v29 = vld [vmem:[#allocation2 + $0x28] sm:$0xff]  ;;  %v541_v30 = vpack.c.bf16 %v88_v26, %v87_v25  ;;  %v89_v31 = vld [vmem:[%s851_s3 + $0x60] sm:$0xff] }
  0x19   :  { %60 = vperm.xlu0 %606, %v46_v2   ;;  %551 = vmatpush3.bf16.msra.mxu1 %v550_v23  ;;  %v90_v32 = vld [vmem:[%s851_s3 + $0x68] sm:$0xff]  ;;  %v556_v33 = vpack.c.bf16 %v176_v29, %v175_v28  ;;  %v177_v34 = vld [vmem:[#allocation2 + $0x30] sm:$0xff]  ;;  %v178_v35 = vld [vmem:[#allocation2 + $0x38] sm:$0xff] }
  0x1a   :  { %530 = vmatpush3.bf16.msra.mxu0 %v529_v8  ;;  %552 = vmatprep.subr.bf16.mxu1 %v635_v1  ;;  %v544_v36 = vpack.c.bf16 %v90_v32, %v89_v31  ;;  %v91_v37 = vld [vmem:[%s851_s3 + $0x70] sm:$0xff]  ;;  %v92_v38 = vld [vmem:[%s851_s3 + $0x78] sm:$0xff]  ;;  %v559_v39 = vpack.c.bf16 %v178_v35, %v177_v34  ;;  %v179_v40 = vld [vmem:[#allocation2 + $0x40] sm:$0xff] }
  0x1b   :  { %531 = vmatprep.subr.bf16.mxu0 %v635_v1  ;;  %v180_v41 = vld [vmem:[#allocation2 + $0x48] sm:$0xff]  ;;  %v547_v42 = vpack.c.bf16 %v92_v38, %v91_v37  ;;  %v181_v44 = vld [vmem:[#allocation2 + $0x50] sm:$0xff]  ;;  %v182_v45 = vld [vmem:[#allocation2 + $0x58] sm:$0xff] }
  0x1c   :  { %v562_v43 = vpack.c.bf16 %v180_v41, %v179_v40  ;;  %v565_v46 = vpack.c.bf16 %v182_v45, %v181_v44  ;;  %v183_v47 = vld [vmem:[#allocation2 + $0x60] sm:$0xff]  ;;  %v184_v48 = vld [vmem:[#allocation2 + $0x68] sm:$0xff]  ;;  %v47_v54 = vld [vmem:[%s849_s1] sm:$0x3] }
  0x1d   :  { %554 = vmatpush3.bf16.msra.mxu1 %v553_v27  ;;  %v568_v49 = vpack.c.bf16 %v184_v48, %v183_v47  ;;  %v57_v56 = vrot.slane %v47_v54, %v56_v52  ;;  %v66_v57 = vrot.slane %v47_v54, %v65_v53  ;;  %v365_v61 = vld [vmem:[%s850_s2] ss:$0 sm:$0xff]  ;;  %v185_v2 = vld [vmem:[#allocation2 + $0x70] sm:$0xff]  ;;  %v266_v6 = vld [vmem:[%s855_s7 + $0x8] sm:$0xff] }
  0x1e   :  { %533 = vmatpush3.bf16.msra.mxu0 %v532_v12  ;;  %555 = vmatprep.subr.bf16.mxu1 %v635_v1  ;;  %v186_v3 = vld [vmem:[#allocation2 + $0x78] sm:$0xff]  ;;  %v267_v7 = vld [vmem:[%s855_s7 + $0x10] sm:$0xff]  ;;  %v268_v9 = vld [vmem:[%s855_s7 + $0x18] sm:$0xff] }
  0x1f   :  { %534 = vmatprep.subr.bf16.mxu0 %v635_v1  ;;  %v571_v4 = vpack.c.bf16 %v186_v3, %v185_v2  ;;  %v265_v5 = vld [vmem:[%s855_s7] sm:$0xff]  ;;  %v577_v10 = vpack.c.bf16 %v268_v9, %v267_v7  ;;  %v270_v12 = vld [vmem:[%s855_s7 + $0x28] sm:$0xff]  ;;  %v271_v14 = vld [vmem:[%s855_s7 + $0x30] sm:$0xff] }
  0x20   :  { %v574_v8 = vpack.c.bf16 %v266_v6, %v265_v5  ;;  %v269_v11 = vld [vmem:[%s855_s7 + $0x20] sm:$0xff]  ;;  %v274_v18 = vld [vmem:[%s855_s7 + $0x48] sm:$0xff]  ;;  %v275_v20 = vld [vmem:[%s855_s7 + $0x50] sm:$0xff] }
  0x21   :  { %557 = vmatpush3.bf16.msra.mxu1 %v556_v33  ;;  %v580_v13 = vpack.c.bf16 %v270_v12, %v269_v11  ;;  %v273_v17 = vld [vmem:[%s855_s7 + $0x40] sm:$0xff]  ;;  %v276_v21 = vld [vmem:[%s855_s7 + $0x58] sm:$0xff]  ;;  %v278_v24 = vld [vmem:[%s855_s7 + $0x68] sm:$0xff] }
  0x22   :  { %536 = vmatpush3.bf16.msra.mxu0 %v535_v16  ;;  %558 = vmatprep.subr.bf16.mxu1 %v635_v1  ;;  %v586_v19 = vpack.c.bf16 %v274_v18, %v273_v17  ;;  %v277_v23 = vld [vmem:[%s855_s7 + $0x60] sm:$0xff]  ;;  %v279_v31 = vld [vmem:[%s855_s7 + $0x70] sm:$0xff]  ;;  %v280_v32 = vld [vmem:[%s855_s7 + $0x78] sm:$0xff] }
  0x23   :  { %537 = vmatprep.subr.bf16.mxu0 %v635_v1  ;;  %v592_v25 = vpack.c.bf16 %v278_v24, %v277_v23  ;;  %v366_v26 = vld [vmem:[%s852_s4] ss:$0 sm:$0xff]  ;;  %v595_v33 = vpack.c.bf16 %v280_v32, %v279_v31 }
  0x24   :  { %v368_v38 = vld [vmem:[%s856_s8] ss:$0 sm:$0xff] }
  0x25   :  { %560 = vmatpush3.bf16.msra.mxu1 %v559_v39 }
  0x26   :  { %539 = vmatpush3.bf16.msra.mxu0 %v538_v22  ;;  %561 = vmatprep.subr.bf16.mxu1 %v635_v1  ;;  %v589_v22 = vpack.c.bf16 %v276_v21, %v275_v20 }
  0x27   :  { %540 = vmatprep.subr.bf16.mxu0 %v635_v1 }
  0x29   :  { %563 = vmatpush3.bf16.msra.mxu1 %v562_v43 }
  0x2a   :  { %542 = vmatpush3.bf16.msra.mxu0 %v541_v30  ;;  %564 = vmatprep.subr.bf16.mxu1 %v635_v1 }
  0x2b   :  { %543 = vmatprep.subr.bf16.mxu0 %v635_v1 }
  0x2d   :  { %566 = vmatpush3.bf16.msra.mxu1 %v565_v46 }
  0x2e   :  { %545 = vmatpush3.bf16.msra.mxu0 %v544_v36  ;;  %567 = vmatprep.subr.bf16.mxu1 %v635_v1 }
  0x2f   :  { %546 = vmatprep.subr.bf16.mxu0 %v635_v1 }
  0x31   :  { %569 = vmatpush3.bf16.msra.mxu1 %v568_v49 }
  0x32   :  { %548 = vmatpush3.bf16.msra.mxu0 %v547_v42  ;;  %570 = vmatprep.subr.bf16.mxu1 %v635_v1 }
  0x33   :  { %573 = vmatprep.subr.bf16.mxu0 %v635_v1 }
  0x35   :  { %572 = vmatpush3.bf16.msra.mxu1 %v571_v4 }
  0x93   :  { %v52_v55 = vpop.permute.xlu0 %51 }
  0x94   :  { %v58_v59 = vmul.f32 %v57_v56, %v52_v55 }
  0x98   :  { %v61_v58 = vpop.permute.xlu0 %60 }
  0x99   :  { %v67_v60 = vmul.f32 %v66_v57, %v61_v58 }
  0x9b   :  { %v68_v62 = vadd.f32 %v67_v60, %v58_v59 }
  0x9d   :  { %v75_v63 = vadd.f32 %v365_v61, %v68_v62 }
  0x9f   :  { %v76_v0 = vmax.f32 %v75_v63, 0.0 }
  0xa1   :  { %453 = vmatmul.mubr.f32.vlgmr.msra.gmra.mrb[0].mxu0 %v76_v0 }
  0xa2   :  { %522 = vmatprep.mubr.msk.f32.mxu0 %vm637_vm0, %v638_v15  ;;  %575 = vmatpush3.bf16.msra.mxu0 %v574_v8  ;;  %v272_v15 = vld [vmem:[%s855_s7 + $0x38] sm:$0xff] }
  0xa3   :  { %576 = vmatprep.subr.bf16.mxu0 %v635_v1  ;;  %v583_v16 = vpack.c.bf16 %v272_v15, %v271_v14 }
  0xa6   :  { %578 = vmatpush3.bf16.msra.mxu0 %v577_v10 }
  0xa7   :  { %579 = vmatprep.subr.bf16.mxu0 %v635_v1 }
  0xaa   :  { %581 = vmatpush3.bf16.msra.mxu0 %v580_v13 }
  0xab   :  { %582 = vmatprep.subr.bf16.mxu0 %v635_v1 }
  0xae   :  { %584 = vmatpush3.bf16.msra.mxu0 %v583_v16 }
  0xaf   :  { %585 = vmatprep.subr.bf16.mxu0 %v635_v1 }
  0xb2   :  { %587 = vmatpush3.bf16.msra.mxu0 %v586_v19 }
  0xb3   :  { %588 = vmatprep.subr.bf16.mxu0 %v635_v1 }
  0xb6   :  { %590 = vmatpush3.bf16.msra.mxu0 %v589_v22 }
  0xb7   :  { %591 = vmatprep.subr.bf16.mxu0 %v635_v1 }
  0xba   :  { %593 = vmatpush3.bf16.msra.mxu0 %v592_v25 }
  0xbb   :  { %594 = vmatprep.subr.bf16.mxu0 %v635_v1  ;;  %v367_v1 = vld [vmem:[%s854_s6] ss:$0 sm:$0xff] }
  0xbe   :  { %596 = vmatpush3.bf16.msra.mxu0 %v595_v33 }
 0x174   :  { %v166_v27 = vpop.f32.mrb[0].mxu0 }
 0x175   :  { %v167_v28 = vadd.f32 %v366_v26, %v166_v27  ;;  %v454_v29 = vpop.f32.mrb[1].mxu0 }
 0x177   :  { %v170_v30 = vmax.f32 %v167_v28, 0.0 }
 0x179   :  { %488 = vmatmul.mubr.f32.vlgmr.msra.gmra.mrb[0].mxu1 %v170_v30 }
 0x24c   :  { %v260_v34 = vpop.f32.mrb[0].mxu1 }
 0x24d   :  { %v261_v35 = vadd.f32 %v367_v1, %v260_v34  ;;  %v489_v36 = vpop.f32.mrb[1].mxu1 }
 0x24f   :  { %v264_v37 = vmax.f32 %v261_v35, 0.0 }
 0x251   :  { %523 = vmatmul.mubr.f32.vlgmr.msra.gmra.mrb[2].mxu0 %v264_v37 }
 0x324   :  { %v354_v39 = vpop.f32.mrb[2].mxu0 }
 0x325   :  { %v355_v40 = vadd.f32 %v368_v38, %v354_v39  ;;  %v524_v41 = vpop.f32.mrb[3].mxu0 }
 0x327   :  { %359 = vst.msk [vmem:[%s857_s9] sm:$0xff] %vm358_vm1, %v355_v40 }
 0x328   :  { %364 = vsyncpa [#allocation3], 1 }

</bundles_post_ra>
